<compile_context>
chip_gen: v5e
topology: v5e:2x2
jax: 0.10.0
libtpu: 0.0.40
codegen_flags: <defaults>
</compile_context>

<pallas_src>
import jax
import jax.numpy as jnp
from jax.experimental import pallas as pl
from jax.experimental.pallas import tpu as pltpu


def _gru_kernel(x_ref, h0_ref, wx_ref, bx_ref, wh_ref, bhn_ref,
                wout_ref, bout_ref, out_ref, hout_ref, hhist_ref):
    B, H = h0_ref.shape                 # static
    TB = x_ref.shape[0]                 # static
    T = TB // B

    # --- Input projections for ALL timesteps in one MXU matmul -------------
    # gx columns: [r | z | n] pre-activations from x, with b_ir+b_hr,
    # b_iz+b_hz and b_in already folded in (b_hn stays separate because of
    # the r * (W_hn h + b_hn) term).
    gx = jnp.dot(x_ref[...], wx_ref[...],
                 preferred_element_type=jnp.float32) + bx_ref[...]   # (T*B, 3H)

    wh = wh_ref[...]                    # (H, 3H), hoisted out of the loop
    b_hn = bhn_ref[...]                 # (1, H)
    h = h0_ref[...]                     # (B, H), carried in vregs

    # --- Serial recurrence: 1 fused MXU matmul + 2 EUP pushes per step -----
    # Fully unrolled (small static T). TODO(synk): lax.fori_loop for large T.
    for t in range(T):
        gx_t = gx[t * B:(t + 1) * B, :]                              # (B, 3H)
        gh = jnp.dot(h, wh, preferred_element_type=jnp.float32)      # (B, 3H)

        rz = jax.nn.sigmoid(gx_t[:, :2 * H] + gh[:, :2 * H])         # (B, 2H)
        r = rz[:, :H]
        z = rz[:, H:]
        n = jnp.tanh(gx_t[:, 2 * H:] + r * (gh[:, 2 * H:] + b_hn))   # (B, H)
        h = (1.0 - z) * n + z * h                                    # (B, H)

        hhist_ref[t * B:(t + 1) * B, :] = h     # stash for the deferred head

    hout_ref[...] = h.astype(hout_ref.dtype)    # final hidden, stored once

    # --- Output head (Linear + Sigmoid), off the recurrence ----------------
    y = jnp.dot(hhist_ref[...], wout_ref[...],
                preferred_element_type=jnp.float32) + bout_ref[...]  # (T*B, D_in)
    out_ref[...] = jax.nn.sigmoid(y).astype(out_ref.dtype)           # one bulk store


def prepare_params(params):
    """One-time layout prep: per-gate transposed/concatenated weights, fused biases."""
    H = params["w_hh"].shape[1]
    D_in = params["w_ih"].shape[1]

    # PyTorch gate order in w_ih / w_hh rows is [r; z; n]; transposing keeps
    # that order along the lane (column) axis.
    wx = params["w_ih"].T                                   # (D_in, 3H)
    wh = params["w_hh"].T                                   # (H, 3H)

    # Biases folded into the batched input projection: [b_ir+b_hr | b_iz+b_hz | b_in]
    bx = jnp.concatenate(
        [params["b_ih"][:2 * H] + params["b_hh"][:2 * H],
         params["b_ih"][2 * H:3 * H]]).reshape(1, 3 * H)
    b_hn = params["b_hh"][2 * H:3 * H].reshape(1, H)

    wout = params["w_out"].T                                # (H, D_in)
    bout = params["b_out"].reshape(1, D_in)

    return {"wx": wx, "bx": bx, "wh": wh, "b_hn": b_hn, "wout": wout, "bout": bout}


def generalist_forward(x, hidden, prepped, noise):
    """Mirrors GeneralistModel.forward(input, hidden)."""
    T, B, D_in = x.shape
    H = prepped["wh"].shape[0]

    # hidden = hidden + uniform(-5, 5, (1, 1, H))  (broadcasts over batch)
    h0 = (hidden + noise).reshape(B, H)
    x_flat = x.reshape(T * B, D_in)

    flops = 2 * T * B * (3 * D_in * H + 3 * H * H + H * D_in)
    transcendentals = T * B * (3 * H + D_in)
    bytes_accessed = 4 * (2 * T * B * D_in + 2 * B * H
                          + 3 * D_in * H + 3 * H * H + H * D_in
                          + 4 * H + D_in)

    vmem = pl.BlockSpec(memory_space=pltpu.MemorySpace.VMEM)

    out_flat, h_out = pl.pallas_call(
        _gru_kernel,
        out_shape=(
            jax.ShapeDtypeStruct((T * B, D_in), jnp.float32),
            jax.ShapeDtypeStruct((B, H), jnp.float32),
        ),
        in_specs=[vmem] * 8,
        out_specs=(vmem, vmem),
        scratch_shapes=[pltpu.VMEM((T * B, H), jnp.float32)],
        cost_estimate=pl.CostEstimate(flops=flops,
                                      transcendentals=transcendentals,
                                      bytes_accessed=bytes_accessed),
    )(x_flat, h0, prepped["wx"], prepped["bx"], prepped["wh"], prepped["b_hn"],
      prepped["wout"], prepped["bout"])

    return out_flat.reshape(T, B, D_in), h_out.reshape(1, B, H)


def init_params(key, input_size, n_hidden):
    """Deterministic parameter init matching nn.GRU / nn.Linear shapes."""
    ks = jax.random.split(key, 6)
    s = 1.0 / jnp.sqrt(n_hidden)
    return {
        "w_ih": jax.random.uniform(ks[0], (3 * n_hidden, input_size),
                                   jnp.float32, -s, s),
        "w_hh": jax.random.uniform(ks[1], (3 * n_hidden, n_hidden),
                                   jnp.float32, -s, s),
        "b_ih": jax.random.uniform(ks[2], (3 * n_hidden,), jnp.float32, -s, s),
        "b_hh": jax.random.uniform(ks[3], (3 * n_hidden,), jnp.float32, -s, s),
        "w_out": jax.random.uniform(ks[4], (input_size, n_hidden),
                                    jnp.float32, -s, s),
        "b_out": jax.random.uniform(ks[5], (input_size,), jnp.float32, -s, s),
    }


if __name__ == "__main__":
    T, B = 8, 2
    INPUT_SIZE, N_HIDDEN = 16, 32

    key = jax.random.PRNGKey(0)
    k_param, k_x, k_noise = jax.random.split(key, 3)

    params = init_params(k_param, INPUT_SIZE, N_HIDDEN)
    prepped = prepare_params(params)                          # one-time layout prep

    x = jax.random.normal(k_x, (T, B, INPUT_SIZE), jnp.float32)
    hidden = jnp.zeros((1, B, N_HIDDEN), jnp.float32)         # initHidden (broadcast to batch)
    # torch.Tensor(1, 1, nHidden).uniform_(-5, 5) equivalent (deterministic):
    noise = jax.random.uniform(k_noise, (1, 1, N_HIDDEN), jnp.float32, -5.0, 5.0)

    fwd = jax.jit(generalist_forward)
    out, h_out = fwd(x, hidden, prepped, noise)
    jax.block_until_ready((out, h_out))

    assert out.shape == (T, B, INPUT_SIZE)
    assert h_out.shape == (1, B, N_HIDDEN)
    assert bool(jnp.all(jnp.isfinite(out))) and bool(jnp.all(jnp.isfinite(h_out)))
    assert bool(jnp.all((out >= 0.0) & (out <= 1.0)))         # sigmoid range sanity
    print("KERNEL_OK")
</pallas_src>

<mosaic_0001>
module attributes {stable_mosaic.version = 11 : i64} {
  func.func @_gru_kernel(%arg0: memref<16x16xf32, #tpu.memory_space<vmem>>, %arg1: memref<2x32xf32, #tpu.memory_space<vmem>>, %arg2: memref<16x96xf32, #tpu.memory_space<vmem>>, %arg3: memref<1x96xf32, #tpu.memory_space<vmem>>, %arg4: memref<32x96xf32, #tpu.memory_space<vmem>>, %arg5: memref<1x32xf32, #tpu.memory_space<vmem>>, %arg6: memref<32x16xf32, #tpu.memory_space<vmem>>, %arg7: memref<1x16xf32, #tpu.memory_space<vmem>>, %arg8: memref<16x16xf32, #tpu.memory_space<vmem>>, %arg9: memref<2x32xf32, #tpu.memory_space<vmem>>, %arg10: memref<16x32xf32, #tpu.memory_space<vmem>>) attributes {dimension_semantics = [], scalar_prefetch = 0 : i64, scratch_operands = 1 : i64, tpu.core_type = #tpu.core_type<tc>} {
    %c0 = arith.constant 0 : index
    %c0_0 = arith.constant 0 : index
    %0 = vector.load %arg0[%c0, %c0_0] : memref<16x16xf32, #tpu.memory_space<vmem>>, vector<16x16xf32>
    %c0_1 = arith.constant 0 : index
    %c0_2 = arith.constant 0 : index
    %1 = vector.load %arg2[%c0_1, %c0_2] : memref<16x96xf32, #tpu.memory_space<vmem>>, vector<16x96xf32>
    %cst = arith.constant dense<0.000000e+00> : vector<16x96xf32>
    %2 = tpu.matmul %0, %1, %cst {dimension_numbers = #tpu.dot_dimension_numbers<[1], [0], [0], [1], [0, 0, 1, 1], [], []>} : vector<16x16xf32>, vector<16x96xf32>, vector<16x96xf32> -> vector<16x96xf32>
    %c0_3 = arith.constant 0 : index
    %c0_4 = arith.constant 0 : index
    %3 = vector.load %arg3[%c0_3, %c0_4] : memref<1x96xf32, #tpu.memory_space<vmem>>, vector<1x96xf32>
    %4 = vector.broadcast %3 : vector<1x96xf32> to vector<16x96xf32>
    %5 = arith.addf %2, %4 : vector<16x96xf32>
    %c0_5 = arith.constant 0 : index
    %c0_6 = arith.constant 0 : index
    %6 = vector.load %arg4[%c0_5, %c0_6] : memref<32x96xf32, #tpu.memory_space<vmem>>, vector<32x96xf32>
    %c0_7 = arith.constant 0 : index
    %c0_8 = arith.constant 0 : index
    %7 = vector.load %arg5[%c0_7, %c0_8] : memref<1x32xf32, #tpu.memory_space<vmem>>, vector<1x32xf32>
    %c0_9 = arith.constant 0 : index
    %c0_10 = arith.constant 0 : index
    %8 = vector.load %arg1[%c0_9, %c0_10] : memref<2x32xf32, #tpu.memory_space<vmem>>, vector<2x32xf32>
    %9 = vector.extract_strided_slice %5 {offsets = [0, 0], sizes = [2, 96], strides = [1, 1]} : vector<16x96xf32> to vector<2x96xf32>
    %cst_11 = arith.constant dense<0.000000e+00> : vector<2x96xf32>
    %10 = tpu.matmul %8, %6, %cst_11 {dimension_numbers = #tpu.dot_dimension_numbers<[1], [0], [0], [1], [0, 0, 1, 1], [], []>} : vector<2x32xf32>, vector<32x96xf32>, vector<2x96xf32> -> vector<2x96xf32>
    %11 = vector.extract_strided_slice %9 {offsets = [0, 0], sizes = [2, 64], strides = [1, 1]} : vector<2x96xf32> to vector<2x64xf32>
    %12 = vector.extract_strided_slice %10 {offsets = [0, 0], sizes = [2, 64], strides = [1, 1]} : vector<2x96xf32> to vector<2x64xf32>
    %13 = arith.addf %11, %12 : vector<2x64xf32>
    %14 = arith.negf %13 : vector<2x64xf32>
    %15 = math.exp %14 : vector<2x64xf32>
    %cst_12 = arith.constant 1.000000e+00 : f32
    %16 = vector.broadcast %cst_12 : f32 to vector<2x64xf32>
    %17 = arith.addf %16, %15 : vector<2x64xf32>
    %18 = arith.divf %16, %17 : vector<2x64xf32>
    %19 = vector.extract_strided_slice %18 {offsets = [0, 0], sizes = [2, 32], strides = [1, 1]} : vector<2x64xf32> to vector<2x32xf32>
    %20 = vector.extract_strided_slice %18 {offsets = [0, 32], sizes = [2, 32], strides = [1, 1]} : vector<2x64xf32> to vector<2x32xf32>
    %21 = vector.extract_strided_slice %9 {offsets = [0, 64], sizes = [2, 32], strides = [1, 1]} : vector<2x96xf32> to vector<2x32xf32>
    %22 = vector.extract_strided_slice %10 {offsets = [0, 64], sizes = [2, 32], strides = [1, 1]} : vector<2x96xf32> to vector<2x32xf32>
    %23 = vector.broadcast %7 : vector<1x32xf32> to vector<2x32xf32>
    %24 = arith.addf %22, %23 : vector<2x32xf32>
    %25 = arith.mulf %19, %24 : vector<2x32xf32>
    %26 = arith.addf %21, %25 : vector<2x32xf32>
    %27 = math.tanh %26 : vector<2x32xf32>
    %cst_13 = arith.constant 1.000000e+00 : f32
    %28 = vector.broadcast %cst_13 : f32 to vector<2x32xf32>
    %29 = arith.subf %28, %20 : vector<2x32xf32>
    %30 = arith.mulf %29, %27 : vector<2x32xf32>
    %31 = arith.mulf %20, %8 : vector<2x32xf32>
    %32 = arith.addf %30, %31 : vector<2x32xf32>
    %c0_14 = arith.constant 0 : index
    %c0_15 = arith.constant 0 : index
    %33 = vector.load %arg10[%c0_14, %c0_15] : memref<16x32xf32, #tpu.memory_space<vmem>>, vector<2x32xf32>
    tpu.vector_store %arg10[%c0_14, %c0_15], %32 {strides = array<i32>} : memref<16x32xf32, #tpu.memory_space<vmem>>, vector<2x32xf32>,
    %34 = vector.extract_strided_slice %5 {offsets = [2, 0], sizes = [2, 96], strides = [1, 1]} : vector<16x96xf32> to vector<2x96xf32>
    %cst_16 = arith.constant dense<0.000000e+00> : vector<2x96xf32>
    %35 = tpu.matmul %32, %6, %cst_16 {dimension_numbers = #tpu.dot_dimension_numbers<[1], [0], [0], [1], [0, 0, 1, 1], [], []>} : vector<2x32xf32>, vector<32x96xf32>, vector<2x96xf32> -> vector<2x96xf32>
    %36 = vector.extract_strided_slice %34 {offsets = [0, 0], sizes = [2, 64], strides = [1, 1]} : vector<2x96xf32> to vector<2x64xf32>
    %37 = vector.extract_strided_slice %35 {offsets = [0, 0], sizes = [2, 64], strides = [1, 1]} : vector<2x96xf32> to vector<2x64xf32>
    %38 = arith.addf %36, %37 : vector<2x64xf32>
    %39 = arith.negf %38 : vector<2x64xf32>
    %40 = math.exp %39 : vector<2x64xf32>
    %cst_17 = arith.constant 1.000000e+00 : f32
    %41 = vector.broadcast %cst_17 : f32 to vector<2x64xf32>
    %42 = arith.addf %41, %40 : vector<2x64xf32>
    %43 = arith.divf %41, %42 : vector<2x64xf32>
    %44 = vector.extract_strided_slice %43 {offsets = [0, 0], sizes = [2, 32], strides = [1, 1]} : vector<2x64xf32> to vector<2x32xf32>
    %45 = vector.extract_strided_slice %43 {offsets = [0, 32], sizes = [2, 32], strides = [1, 1]} : vector<2x64xf32> to vector<2x32xf32>
    %46 = vector.extract_strided_slice %34 {offsets = [0, 64], sizes = [2, 32], strides = [1, 1]} : vector<2x96xf32> to vector<2x32xf32>
    %47 = vector.extract_strided_slice %35 {offsets = [0, 64], sizes = [2, 32], strides = [1, 1]} : vector<2x96xf32> to vector<2x32xf32>
    %48 = vector.broadcast %7 : vector<1x32xf32> to vector<2x32xf32>
    %49 = arith.addf %47, %48 : vector<2x32xf32>
    %50 = arith.mulf %44, %49 : vector<2x32xf32>
    %51 = arith.addf %46, %50 : vector<2x32xf32>
    %52 = math.tanh %51 : vector<2x32xf32>
    %cst_18 = arith.constant 1.000000e+00 : f32
    %53 = vector.broadcast %cst_18 : f32 to vector<2x32xf32>
    %54 = arith.subf %53, %45 : vector<2x32xf32>
    %55 = arith.mulf %54, %52 : vector<2x32xf32>
    %56 = arith.mulf %45, %32 : vector<2x32xf32>
    %57 = arith.addf %55, %56 : vector<2x32xf32>
    %c2 = arith.constant 2 : index
    %c0_19 = arith.constant 0 : index
    %58 = vector.load %arg10[%c2, %c0_19] : memref<16x32xf32, #tpu.memory_space<vmem>>, vector<2x32xf32>
    tpu.vector_store %arg10[%c2, %c0_19], %57 {strides = array<i32>} : memref<16x32xf32, #tpu.memory_space<vmem>>, vector<2x32xf32>,
    %59 = vector.extract_strided_slice %5 {offsets = [4, 0], sizes = [2, 96], strides = [1, 1]} : vector<16x96xf32> to vector<2x96xf32>
    %cst_20 = arith.constant dense<0.000000e+00> : vector<2x96xf32>
    %60 = tpu.matmul %57, %6, %cst_20 {dimension_numbers = #tpu.dot_dimension_numbers<[1], [0], [0], [1], [0, 0, 1, 1], [], []>} : vector<2x32xf32>, vector<32x96xf32>, vector<2x96xf32> -> vector<2x96xf32>
    %61 = vector.extract_strided_slice %59 {offsets = [0, 0], sizes = [2, 64], strides = [1, 1]} : vector<2x96xf32> to vector<2x64xf32>
    %62 = vector.extract_strided_slice %60 {offsets = [0, 0], sizes = [2, 64], strides = [1, 1]} : vector<2x96xf32> to vector<2x64xf32>
    %63 = arith.addf %61, %62 : vector<2x64xf32>
    %64 = arith.negf %63 : vector<2x64xf32>
    %65 = math.exp %64 : vector<2x64xf32>
    %cst_21 = arith.constant 1.000000e+00 : f32
    %66 = vector.broadcast %cst_21 : f32 to vector<2x64xf32>
    %67 = arith.addf %66, %65 : vector<2x64xf32>
    %68 = arith.divf %66, %67 : vector<2x64xf32>
    %69 = vector.extract_strided_slice %68 {offsets = [0, 0], sizes = [2, 32], strides = [1, 1]} : vector<2x64xf32> to vector<2x32xf32>
    %70 = vector.extract_strided_slice %68 {offsets = [0, 32], sizes = [2, 32], strides = [1, 1]} : vector<2x64xf32> to vector<2x32xf32>
    %71 = vector.extract_strided_slice %59 {offsets = [0, 64], sizes = [2, 32], strides = [1, 1]} : vector<2x96xf32> to vector<2x32xf32>
    %72 = vector.extract_strided_slice %60 {offsets = [0, 64], sizes = [2, 32], strides = [1, 1]} : vector<2x96xf32> to vector<2x32xf32>
    %73 = vector.broadcast %7 : vector<1x32xf32> to vector<2x32xf32>
    %74 = arith.addf %72, %73 : vector<2x32xf32>
    %75 = arith.mulf %69, %74 : vector<2x32xf32>
    %76 = arith.addf %71, %75 : vector<2x32xf32>
    %77 = math.tanh %76 : vector<2x32xf32>
    %cst_22 = arith.constant 1.000000e+00 : f32
    %78 = vector.broadcast %cst_22 : f32 to vector<2x32xf32>
    %79 = arith.subf %78, %70 : vector<2x32xf32>
    %80 = arith.mulf %79, %77 : vector<2x32xf32>
    %81 = arith.mulf %70, %57 : vector<2x32xf32>
    %82 = arith.addf %80, %81 : vector<2x32xf32>
    %c4 = arith.constant 4 : index
    %c0_23 = arith.constant 0 : index
    %83 = vector.load %arg10[%c4, %c0_23] : memref<16x32xf32, #tpu.memory_space<vmem>>, vector<2x32xf32>
    tpu.vector_store %arg10[%c4, %c0_23], %82 {strides = array<i32>} : memref<16x32xf32, #tpu.memory_space<vmem>>, vector<2x32xf32>,
    %84 = vector.extract_strided_slice %5 {offsets = [6, 0], sizes = [2, 96], strides = [1, 1]} : vector<16x96xf32> to vector<2x96xf32>
    %cst_24 = arith.constant dense<0.000000e+00> : vector<2x96xf32>
    %85 = tpu.matmul %82, %6, %cst_24 {dimension_numbers = #tpu.dot_dimension_numbers<[1], [0], [0], [1], [0, 0, 1, 1], [], []>} : vector<2x32xf32>, vector<32x96xf32>, vector<2x96xf32> -> vector<2x96xf32>
    %86 = vector.extract_strided_slice %84 {offsets = [0, 0], sizes = [2, 64], strides = [1, 1]} : vector<2x96xf32> to vector<2x64xf32>
    %87 = vector.extract_strided_slice %85 {offsets = [0, 0], sizes = [2, 64], strides = [1, 1]} : vector<2x96xf32> to vector<2x64xf32>
    %88 = arith.addf %86, %87 : vector<2x64xf32>
    %89 = arith.negf %88 : vector<2x64xf32>
    %90 = math.exp %89 : vector<2x64xf32>
    %cst_25 = arith.constant 1.000000e+00 : f32
    %91 = vector.broadcast %cst_25 : f32 to vector<2x64xf32>
    %92 = arith.addf %91, %90 : vector<2x64xf32>
    %93 = arith.divf %91, %92 : vector<2x64xf32>
    %94 = vector.extract_strided_slice %93 {offsets = [0, 0], sizes = [2, 32], strides = [1, 1]} : vector<2x64xf32> to vector<2x32xf32>
    %95 = vector.extract_strided_slice %93 {offsets = [0, 32], sizes = [2, 32], strides = [1, 1]} : vector<2x64xf32> to vector<2x32xf32>
    %96 = vector.extract_strided_slice %84 {offsets = [0, 64], sizes = [2, 32], strides = [1, 1]} : vector<2x96xf32> to vector<2x32xf32>
    %97 = vector.extract_strided_slice %85 {offsets = [0, 64], sizes = [2, 32], strides = [1, 1]} : vector<2x96xf32> to vector<2x32xf32>
    %98 = vector.broadcast %7 : vector<1x32xf32> to vector<2x32xf32>
    %99 = arith.addf %97, %98 : vector<2x32xf32>
    %100 = arith.mulf %94, %99 : vector<2x32xf32>
    %101 = arith.addf %96, %100 : vector<2x32xf32>
    %102 = math.tanh %101 : vector<2x32xf32>
    %cst_26 = arith.constant 1.000000e+00 : f32
    %103 = vector.broadcast %cst_26 : f32 to vector<2x32xf32>
    %104 = arith.subf %103, %95 : vector<2x32xf32>
    %105 = arith.mulf %104, %102 : vector<2x32xf32>
    %106 = arith.mulf %95, %82 : vector<2x32xf32>
    %107 = arith.addf %105, %106 : vector<2x32xf32>
    %c6 = arith.constant 6 : index
    %c0_27 = arith.constant 0 : index
    %108 = vector.load %arg10[%c6, %c0_27] : memref<16x32xf32, #tpu.memory_space<vmem>>, vector<2x32xf32>
    tpu.vector_store %arg10[%c6, %c0_27], %107 {strides = array<i32>} : memref<16x32xf32, #tpu.memory_space<vmem>>, vector<2x32xf32>,
    %109 = vector.extract_strided_slice %5 {offsets = [8, 0], sizes = [2, 96], strides = [1, 1]} : vector<16x96xf32> to vector<2x96xf32>
    %cst_28 = arith.constant dense<0.000000e+00> : vector<2x96xf32>
    %110 = tpu.matmul %107, %6, %cst_28 {dimension_numbers = #tpu.dot_dimension_numbers<[1], [0], [0], [1], [0, 0, 1, 1], [], []>} : vector<2x32xf32>, vector<32x96xf32>, vector<2x96xf32> -> vector<2x96xf32>
    %111 = vector.extract_strided_slice %109 {offsets = [0, 0], sizes = [2, 64], strides = [1, 1]} : vector<2x96xf32> to vector<2x64xf32>
    %112 = vector.extract_strided_slice %110 {offsets = [0, 0], sizes = [2, 64], strides = [1, 1]} : vector<2x96xf32> to vector<2x64xf32>
    %113 = arith.addf %111, %112 : vector<2x64xf32>
    %114 = arith.negf %113 : vector<2x64xf32>
    %115 = math.exp %114 : vector<2x64xf32>
    %cst_29 = arith.constant 1.000000e+00 : f32
    %116 = vector.broadcast %cst_29 : f32 to vector<2x64xf32>
    %117 = arith.addf %116, %115 : vector<2x64xf32>
    %118 = arith.divf %116, %117 : vector<2x64xf32>
    %119 = vector.extract_strided_slice %118 {offsets = [0, 0], sizes = [2, 32], strides = [1, 1]} : vector<2x64xf32> to vector<2x32xf32>
    %120 = vector.extract_strided_slice %118 {offsets = [0, 32], sizes = [2, 32], strides = [1, 1]} : vector<2x64xf32> to vector<2x32xf32>
    %121 = vector.extract_strided_slice %109 {offsets = [0, 64], sizes = [2, 32], strides = [1, 1]} : vector<2x96xf32> to vector<2x32xf32>
    %122 = vector.extract_strided_slice %110 {offsets = [0, 64], sizes = [2, 32], strides = [1, 1]} : vector<2x96xf32> to vector<2x32xf32>
    %123 = vector.broadcast %7 : vector<1x32xf32> to vector<2x32xf32>
    %124 = arith.addf %122, %123 : vector<2x32xf32>
    %125 = arith.mulf %119, %124 : vector<2x32xf32>
    %126 = arith.addf %121, %125 : vector<2x32xf32>
    %127 = math.tanh %126 : vector<2x32xf32>
    %cst_30 = arith.constant 1.000000e+00 : f32
    %128 = vector.broadcast %cst_30 : f32 to vector<2x32xf32>
    %129 = arith.subf %128, %120 : vector<2x32xf32>
    %130 = arith.mulf %129, %127 : vector<2x32xf32>
    %131 = arith.mulf %120, %107 : vector<2x32xf32>
    %132 = arith.addf %130, %131 : vector<2x32xf32>
    %c8 = arith.constant 8 : index
    %c0_31 = arith.constant 0 : index
    %133 = vector.load %arg10[%c8, %c0_31] : memref<16x32xf32, #tpu.memory_space<vmem>>, vector<2x32xf32>
    tpu.vector_store %arg10[%c8, %c0_31], %132 {strides = array<i32>} : memref<16x32xf32, #tpu.memory_space<vmem>>, vector<2x32xf32>,
    %134 = vector.extract_strided_slice %5 {offsets = [10, 0], sizes = [2, 96], strides = [1, 1]} : vector<16x96xf32> to vector<2x96xf32>
    %cst_32 = arith.constant dense<0.000000e+00> : vector<2x96xf32>
    %135 = tpu.matmul %132, %6, %cst_32 {dimension_numbers = #tpu.dot_dimension_numbers<[1], [0], [0], [1], [0, 0, 1, 1], [], []>} : vector<2x32xf32>, vector<32x96xf32>, vector<2x96xf32> -> vector<2x96xf32>
    %136 = vector.extract_strided_slice %134 {offsets = [0, 0], sizes = [2, 64], strides = [1, 1]} : vector<2x96xf32> to vector<2x64xf32>
    %137 = vector.extract_strided_slice %135 {offsets = [0, 0], sizes = [2, 64], strides = [1, 1]} : vector<2x96xf32> to vector<2x64xf32>
    %138 = arith.addf %136, %137 : vector<2x64xf32>
    %139 = arith.negf %138 : vector<2x64xf32>
    %140 = math.exp %139 : vector<2x64xf32>
    %cst_33 = arith.constant 1.000000e+00 : f32
    %141 = vector.broadcast %cst_33 : f32 to vector<2x64xf32>
    %142 = arith.addf %141, %140 : vector<2x64xf32>
    %143 = arith.divf %141, %142 : vector<2x64xf32>
    %144 = vector.extract_strided_slice %143 {offsets = [0, 0], sizes = [2, 32], strides = [1, 1]} : vector<2x64xf32> to vector<2x32xf32>
    %145 = vector.extract_strided_slice %143 {offsets = [0, 32], sizes = [2, 32], strides = [1, 1]} : vector<2x64xf32> to vector<2x32xf32>
    %146 = vector.extract_strided_slice %134 {offsets = [0, 64], sizes = [2, 32], strides = [1, 1]} : vector<2x96xf32> to vector<2x32xf32>
    %147 = vector.extract_strided_slice %135 {offsets = [0, 64], sizes = [2, 32], strides = [1, 1]} : vector<2x96xf32> to vector<2x32xf32>
    %148 = vector.broadcast %7 : vector<1x32xf32> to vector<2x32xf32>
    %149 = arith.addf %147, %148 : vector<2x32xf32>
    %150 = arith.mulf %144, %149 : vector<2x32xf32>
    %151 = arith.addf %146, %150 : vector<2x32xf32>
    %152 = math.tanh %151 : vector<2x32xf32>
    %cst_34 = arith.constant 1.000000e+00 : f32
    %153 = vector.broadcast %cst_34 : f32 to vector<2x32xf32>
    %154 = arith.subf %153, %145 : vector<2x32xf32>
    %155 = arith.mulf %154, %152 : vector<2x32xf32>
    %156 = arith.mulf %145, %132 : vector<2x32xf32>
    %157 = arith.addf %155, %156 : vector<2x32xf32>
    %c10 = arith.constant 10 : index
    %c0_35 = arith.constant 0 : index
    %158 = vector.load %arg10[%c10, %c0_35] : memref<16x32xf32, #tpu.memory_space<vmem>>, vector<2x32xf32>
    tpu.vector_store %arg10[%c10, %c0_35], %157 {strides = array<i32>} : memref<16x32xf32, #tpu.memory_space<vmem>>, vector<2x32xf32>,
    %159 = vector.extract_strided_slice %5 {offsets = [12, 0], sizes = [2, 96], strides = [1, 1]} : vector<16x96xf32> to vector<2x96xf32>
    %cst_36 = arith.constant dense<0.000000e+00> : vector<2x96xf32>
    %160 = tpu.matmul %157, %6, %cst_36 {dimension_numbers = #tpu.dot_dimension_numbers<[1], [0], [0], [1], [0, 0, 1, 1], [], []>} : vector<2x32xf32>, vector<32x96xf32>, vector<2x96xf32> -> vector<2x96xf32>
    %161 = vector.extract_strided_slice %159 {offsets = [0, 0], sizes = [2, 64], strides = [1, 1]} : vector<2x96xf32> to vector<2x64xf32>
    %162 = vector.extract_strided_slice %160 {offsets = [0, 0], sizes = [2, 64], strides = [1, 1]} : vector<2x96xf32> to vector<2x64xf32>
    %163 = arith.addf %161, %162 : vector<2x64xf32>
    %164 = arith.negf %163 : vector<2x64xf32>
    %165 = math.exp %164 : vector<2x64xf32>
    %cst_37 = arith.constant 1.000000e+00 : f32
    %166 = vector.broadcast %cst_37 : f32 to vector<2x64xf32>
    %167 = arith.addf %166, %165 : vector<2x64xf32>
    %168 = arith.divf %166, %167 : vector<2x64xf32>
    %169 = vector.extract_strided_slice %168 {offsets = [0, 0], sizes = [2, 32], strides = [1, 1]} : vector<2x64xf32> to vector<2x32xf32>
    %170 = vector.extract_strided_slice %168 {offsets = [0, 32], sizes = [2, 32], strides = [1, 1]} : vector<2x64xf32> to vector<2x32xf32>
    %171 = vector.extract_strided_slice %159 {offsets = [0, 64], sizes = [2, 32], strides = [1, 1]} : vector<2x96xf32> to vector<2x32xf32>
    %172 = vector.extract_strided_slice %160 {offsets = [0, 64], sizes = [2, 32], strides = [1, 1]} : vector<2x96xf32> to vector<2x32xf32>
    %173 = vector.broadcast %7 : vector<1x32xf32> to vector<2x32xf32>
    %174 = arith.addf %172, %173 : vector<2x32xf32>
    %175 = arith.mulf %169, %174 : vector<2x32xf32>
    %176 = arith.addf %171, %175 : vector<2x32xf32>
    %177 = math.tanh %176 : vector<2x32xf32>
    %cst_38 = arith.constant 1.000000e+00 : f32
    %178 = vector.broadcast %cst_38 : f32 to vector<2x32xf32>
    %179 = arith.subf %178, %170 : vector<2x32xf32>
    %180 = arith.mulf %179, %177 : vector<2x32xf32>
    %181 = arith.mulf %170, %157 : vector<2x32xf32>
    %182 = arith.addf %180, %181 : vector<2x32xf32>
    %c12 = arith.constant 12 : index
    %c0_39 = arith.constant 0 : index
    %183 = vector.load %arg10[%c12, %c0_39] : memref<16x32xf32, #tpu.memory_space<vmem>>, vector<2x32xf32>
    tpu.vector_store %arg10[%c12, %c0_39], %182 {strides = array<i32>} : memref<16x32xf32, #tpu.memory_space<vmem>>, vector<2x32xf32>,
    %184 = vector.extract_strided_slice %5 {offsets = [14, 0], sizes = [2, 96], strides = [1, 1]} : vector<16x96xf32> to vector<2x96xf32>
    %cst_40 = arith.constant dense<0.000000e+00> : vector<2x96xf32>
    %185 = tpu.matmul %182, %6, %cst_40 {dimension_numbers = #tpu.dot_dimension_numbers<[1], [0], [0], [1], [0, 0, 1, 1], [], []>} : vector<2x32xf32>, vector<32x96xf32>, vector<2x96xf32> -> vector<2x96xf32>
    %186 = vector.extract_strided_slice %184 {offsets = [0, 0], sizes = [2, 64], strides = [1, 1]} : vector<2x96xf32> to vector<2x64xf32>
    %187 = vector.extract_strided_slice %185 {offsets = [0, 0], sizes = [2, 64], strides = [1, 1]} : vector<2x96xf32> to vector<2x64xf32>
    %188 = arith.addf %186, %187 : vector<2x64xf32>
    %189 = arith.negf %188 : vector<2x64xf32>
    %190 = math.exp %189 : vector<2x64xf32>
    %cst_41 = arith.constant 1.000000e+00 : f32
    %191 = vector.broadcast %cst_41 : f32 to vector<2x64xf32>
    %192 = arith.addf %191, %190 : vector<2x64xf32>
    %193 = arith.divf %191, %192 : vector<2x64xf32>
    %194 = vector.extract_strided_slice %193 {offsets = [0, 0], sizes = [2, 32], strides = [1, 1]} : vector<2x64xf32> to vector<2x32xf32>
    %195 = vector.extract_strided_slice %193 {offsets = [0, 32], sizes = [2, 32], strides = [1, 1]} : vector<2x64xf32> to vector<2x32xf32>
    %196 = vector.extract_strided_slice %184 {offsets = [0, 64], sizes = [2, 32], strides = [1, 1]} : vector<2x96xf32> to vector<2x32xf32>
    %197 = vector.extract_strided_slice %185 {offsets = [0, 64], sizes = [2, 32], strides = [1, 1]} : vector<2x96xf32> to vector<2x32xf32>
    %198 = vector.broadcast %7 : vector<1x32xf32> to vector<2x32xf32>
    %199 = arith.addf %197, %198 : vector<2x32xf32>
    %200 = arith.mulf %194, %199 : vector<2x32xf32>
    %201 = arith.addf %196, %200 : vector<2x32xf32>
    %202 = math.tanh %201 : vector<2x32xf32>
    %cst_42 = arith.constant 1.000000e+00 : f32
    %203 = vector.broadcast %cst_42 : f32 to vector<2x32xf32>
    %204 = arith.subf %203, %195 : vector<2x32xf32>
    %205 = arith.mulf %204, %202 : vector<2x32xf32>
    %206 = arith.mulf %195, %182 : vector<2x32xf32>
    %207 = arith.addf %205, %206 : vector<2x32xf32>
    %c14 = arith.constant 14 : index
    %c0_43 = arith.constant 0 : index
    %208 = vector.load %arg10[%c14, %c0_43] : memref<16x32xf32, #tpu.memory_space<vmem>>, vector<2x32xf32>
    tpu.vector_store %arg10[%c14, %c0_43], %207 {strides = array<i32>} : memref<16x32xf32, #tpu.memory_space<vmem>>, vector<2x32xf32>,
    %c0_44 = arith.constant 0 : index
    %c0_45 = arith.constant 0 : index
    %209 = vector.load %arg9[%c0_44, %c0_45] : memref<2x32xf32, #tpu.memory_space<vmem>>, vector<2x32xf32>
    tpu.vector_store %arg9[%c0_44, %c0_45], %207 {strides = array<i32>} : memref<2x32xf32, #tpu.memory_space<vmem>>, vector<2x32xf32>,
    %c0_46 = arith.constant 0 : index
    %c0_47 = arith.constant 0 : index
    %210 = vector.load %arg10[%c0_46, %c0_47] : memref<16x32xf32, #tpu.memory_space<vmem>>, vector<16x32xf32>
    %c0_48 = arith.constant 0 : index
    %c0_49 = arith.constant 0 : index
    %211 = vector.load %arg6[%c0_48, %c0_49] : memref<32x16xf32, #tpu.memory_space<vmem>>, vector<32x16xf32>
    %cst_50 = arith.constant dense<0.000000e+00> : vector<16x16xf32>
    %212 = tpu.matmul %210, %211, %cst_50 {dimension_numbers = #tpu.dot_dimension_numbers<[1], [0], [0], [1], [0, 0, 1, 1], [], []>} : vector<16x32xf32>, vector<32x16xf32>, vector<16x16xf32> -> vector<16x16xf32>
    %c0_51 = arith.constant 0 : index
    %c0_52 = arith.constant 0 : index
    %213 = vector.load %arg7[%c0_51, %c0_52] : memref<1x16xf32, #tpu.memory_space<vmem>>, vector<1x16xf32>
    %214 = vector.broadcast %213 : vector<1x16xf32> to vector<16x16xf32>
    %215 = arith.addf %212, %214 : vector<16x16xf32>
    %216 = arith.negf %215 : vector<16x16xf32>
    %217 = math.exp %216 : vector<16x16xf32>
    %cst_53 = arith.constant 1.000000e+00 : f32
    %218 = vector.broadcast %cst_53 : f32 to vector<16x16xf32>
    %219 = arith.addf %218, %217 : vector<16x16xf32>
    %220 = arith.divf %218, %219 : vector<16x16xf32>
    %c0_54 = arith.constant 0 : index
    %c0_55 = arith.constant 0 : index
    %221 = vector.load %arg8[%c0_54, %c0_55] : memref<16x16xf32, #tpu.memory_space<vmem>>, vector<16x16xf32>
    tpu.vector_store %arg8[%c0_54, %c0_55], %220 {strides = array<i32>} : memref<16x16xf32, #tpu.memory_space<vmem>>, vector<16x16xf32>,
    return
  }
}

</mosaic_0001>

<bundles_post_ra>
// kernel: generalist_forward.1
= control target key start
LH: loop header
LB: loop body
LE: loop exit
PB: predicated region body
PF: predicated region fallthrough
CT: control target
= control target key end

     0   :  { %15 = vsyncpa [#allocation4], 0  ;;  %s1239_s0 = inlined_call_operand.vmem [shape: f32[16,16], index: 0, kind: input, shape index: {}]   ;;  %s1240_s1 = inlined_call_operand.vmem [shape: f32[2,32], index: 1, kind: input, shape index: {}]   ;;  %s1241_s2 = inlined_call_operand.hbm [shape: f32[16,96], index: 2, kind: input, shape index: {}]   ;;  %s1242_s3 = inlined_call_operand.vmem [shape: f32[1,96], index: 3, kind: input, shape index: {}]   ;;  %s1243_s4 = inlined_call_operand.vmem [shape: f32[32,96], index: 4, kind: input, shape index: {}]   ;;  %s1244_s5 = inlined_call_operand.vmem [shape: f32[1,32], index: 5, kind: input, shape index: {}]   ;;  %s1245_s6 = inlined_call_operand.vmem [shape: f32[32,16], index: 6, kind: input, shape index: {}]   ;;  %s1246_s7 = inlined_call_operand.vmem [shape: f32[1,16], index: 7, kind: input, shape index: {}]   ;;  %s1247_s8 = inlined_call_operand.hbm [shape: f32[16,16], index: 8, kind: output, shape index: {0}]   ;;  %s1248_s9 = inlined_call_operand.hbm [shape: f32[2,32], index: 9, kind: output, shape index: {1}]  }
   0x1   :  { %16 = vsyncpa [#allocation5], 0 }
   0x2   :  { %17 = vsyncpa [#allocation8], 0  ;;  %s26_s11 = sshll.u32 %s1241_s2, 4  ;;  %s977_s12 = smov [#allocation3]   ;;  %s27_s11 = int_to_ptr.hbm [resolvable:$true] %s26_s11 }
   0x3   :  { %s28_s13 = sshll.u32 %s977_s12, 4  ;;  %s978_s14 = smov 128   ;;  %s29_s13 = int_to_ptr.vmem [resolvable:$true] %s28_s13 }
   0x4   :  { %s979_s15 = smov 8  }
   0x5   :  { %34 = dma.hbm_to_vmem [thread:$0]  %s27_s11, 256, %s29_s13, [#allocation4], %s978_s14, %s978_s14, %s979_s15  }
   0x6   :  { %971 = dma.done.wait [#allocation4], 256  }
   0x7   :  { %972 = vsyncadd [#allocation4], 4294967040  ;;  %v1044_v0 = vld [vmem:[%s1243_s4 + $0x18] sm:$0xff]  ;;  %v1049_v2 = vld [vmem:[%s1243_s4 + $0x10] sm:$0xff]  ;;  %vm57_vm0 = vcmask 130048   ;;  %s980_s29 = smov 32  }
   0x8   :  { %v52_v1 = vld [vmem:[#allocation3 + $0x8] sm:$0xff]  ;;  %109 = vmatpush.msra.mxu1 %v1044_v0  ;;  %v51_v3 = vld [vmem:[#allocation3] sm:$0xff]  ;;  %v49_v4 = vld [vmem:[%s1239_s0] sm:$0xff]  ;;  %185 = vmatpush.msra.mxu3 %v1044_v0  ;;  %vm93_vm1 = vcmask 261120   ;;  %s981_s30 = smov 64   ;;  %vm169_vm6 = vcmask 254976  }
   0x9   :  { %78 = vmatpush.msra.mxu0 %v52_v1  ;;  %v1058_v5 = vld [vmem:[%s1243_s4 + $0x8] sm:$0xff]  ;;  %416 = vmatpush.msra.mxu2 %v1044_v0  ;;  %v92_v6 = vld [vmem:[%s1240_s1] sm:$0x3]  ;;  %s795_s22 = sshll.u32 %s1248_s9, 4  ;;  %s781_s27 = sshll.u32 %s1247_s8, 4  ;;  %s796_s22 = int_to_ptr.hbm [resolvable:$true] %s795_s22  ;;  %s782_s27 = int_to_ptr.hbm [resolvable:$true] %s781_s27 }
   0xa   :  { %110 = vmatpush.msra.mxu1 %v1049_v2  ;;  %v840_v7 = vld [vmem:[%s1244_s5] ss:$0 sm:$0xff]  ;;  %160 = vrot.lane.b32.xlu2 %v92_v6, %s980_s29 }
   0xb   :  { %79 = vmatpush.msra.mxu0 %v51_v3  ;;  %v1073_v8 = vld [vmem:[%s1243_s4] sm:$0xff]  ;;  %139 = vrot.lane.b32.xlu0 %v840_v7, %s981_s30 }
   0xc   :  { %810 = vmatmul.msk.f32.vlgmr.msra.gmra.mxu0 %vm57_vm0, %v49_v4  ;;  %111 = vmatpush.msra.mxu1 %v1058_v5  ;;  %v1108_v12 = vld [vmem:[%s1242_s3] ss:$0 sm:$0xff]  ;;  %s982_s3 = smov 96  }
   0xd   :  { %186 = vmatpush.msra.mxu3 %v1049_v2  ;;  %417 = vmatpush.msra.mxu2 %v1049_v2 }
   0xe   :  { %112 = vmatpush.msra.mxu1 %v1073_v8  ;;  %560 = vmatpush.msrb.mxu0 %v1044_v0 }
   0xf   :  { %812 = vmatmul.msk.f32.vlgmr.msra.gmra.mxu1 %vm93_vm1, %v92_v6  ;;  %187 = vmatpush.msra.mxu3 %v1058_v5 }
  0x10   :  { %339 = vmatpush.msrb.mxu1 %v1044_v0  ;;  %418 = vmatpush.msra.mxu2 %v1058_v5 }
  0x11   :  { %188 = vmatpush.msra.mxu3 %v1073_v8  ;;  %561 = vmatpush.msrb.mxu0 %v1049_v2 }
  0x12   :  { %340 = vmatpush.msrb.mxu1 %v1049_v2  ;;  %419 = vmatpush.msra.mxu2 %v1073_v8 }
  0x13   :  { %262 = vmatpush.msrb.mxu3 %v1044_v0  ;;  %562 = vmatpush.msrb.mxu0 %v1058_v5 }
  0x14   :  { %341 = vmatpush.msrb.mxu1 %v1058_v5 }
  0x15   :  { %263 = vmatpush.msrb.mxu3 %v1049_v2  ;;  %563 = vmatpush.msrb.mxu0 %v1073_v8 }
  0x16   :  { %342 = vmatpush.msrb.mxu1 %v1073_v8 }
  0x17   :  { %264 = vmatpush.msrb.mxu3 %v1058_v5 }
  0x18   :  { %636 = vmatpush.msra.mxu1 %v1044_v0 }
  0x19   :  { %265 = vmatpush.msrb.mxu3 %v1073_v8 }
  0x1a   :  { %637 = vmatpush.msra.mxu1 %v1049_v2 }
  0x1c   :  { %638 = vmatpush.msra.mxu1 %v1058_v5 }
  0x1e   :  { %639 = vmatpush.msra.mxu1 %v1073_v8 }
  0x64   :  { %v161_v34 = vpop.permute.xlu2 %160 }
  0x7d   :  { %v1101_v9 = vpop.permute.xlu0 %139 }
  0x89   :  { %v81_v13 = vpop.f32.mrf.mxu0 }
  0x8a   :  { %v1111_v14 = vadd.f32 %v1108_v12, %v81_v13 }
  0x8c   :  { %v114_v10 = vpop.f32.mrf.mxu1 }
  0x8d   :  { %v142_v11 = vadd.f32 %v1101_v9, %v114_v10  ;;  %v117_v15 = vadd.f32 %v114_v10, %v1111_v14 }
  0x8f   :  { %144 = vrot.lane.b32.xlu0 %v142_v11, %s981_s30  ;;  %v813_v16 = vmul.f32 -1.442695, %v117_v15 }
  0x91   :  { %843 = vpow2.f32 %v813_v16 }
  0x97   :  { %v844_v17 = vpop.eup %843 }
  0x98   :  { %v121_v18 = vadd.f32 1.0, %v844_v17 }
  0x9a   :  { %845 = vrcp.f32 %v121_v18  ;;  %v133_v24 = vand.u32 2147483648, %v121_v18  ;;  %vm127_vm3 = vweird.f32 %v121_v18  ;;  %v131_v25 = vand.u32 2147483647, %v121_v18 }
  0x9c   :  { %v134_v27 = vor.u32 1.1754944e-38, %v133_v24  ;;  %vm132_vm5 = vcmp.eq.f32.partialorder %v131_v25, 8.507059e+37 }
  0xa0   :  { %v846_v19 = vpop.eup %845 }
  0xa1   :  { %v123_v20 = vmul.f32 %v846_v19, %v121_v18  ;;  %vm128_vm2 = vweird.f32 %v846_v19 }
  0xa2   :  { %vm129_vm4 = vmor %vm127_vm3, %vm128_vm2 }
  0xa3   :  { %v124_v21 = vsub.f32 1.0, %v123_v20 }
  0xa5   :  { %v125_v22 = vmul.f32 %v846_v19, %v124_v21 }
  0xa7   :  { %v126_v23 = vadd.f32 %v846_v19, %v125_v22 }
  0xa9   :  { %v130_v26 = vsel %vm129_vm4, %v846_v19, %v126_v23 }
  0xaa   :  { %v135_v28 = vsel %vm132_vm5, %v134_v27, %v130_v26 }
  0xab   :  { %v154_v35 = vsub.f32 1.0, %v135_v28  ;;  %v163_v37 = vmul.f32 %v161_v34, %v135_v28 }
 0x101   :  { %v145_v29 = vpop.permute.xlu0 %144 }
 0x102   :  { %v147_v30 = vmul.f32 %v145_v29, %v135_v28 }
 0x104   :  { %149 = vrot.lane.b32.xlu1 %v147_v30, %s981_s30 }
 0x176   :  { %v150_v31 = vpop.permute.xlu1 %149 }
 0x177   :  { %v152_v32 = vadd.f32 %v150_v31, %v1111_v14 }
 0x179   :  { %847 = vtanh.f32 %v152_v32 }
 0x17f   :  { %v848_v33 = vpop.eup %847 }
 0x180   :  { %156 = vrot.lane.b32.xlu1 %v848_v33, %s982_s3 }
 0x1f2   :  { %v157_v36 = vpop.permute.xlu1 %156 }
 0x1f3   :  { %v159_v38 = vmul.f32 %v157_v36, %v154_v35 }
 0x1f5   :  { %v164_v39 = vadd.f32 %v163_v37, %v159_v38 }
 0x1f7   :  { %166 = vrot.lane.b32.xlu2 %v164_v39, %s982_s3 }
 0x251   :  { %v167_v40 = vpop.permute.xlu2 %166 }
 0x252   :  { %170 = vst.msk [vmem:[#allocation2] sm:$0x3] %vm169_vm6, %v167_v40  ;;  %814 = vmatmul.msk.f32.vlgmr.msra.gmra.mxu3 %vm93_vm1, %v167_v40 }
 0x253   :  { %484 = vmatpush.msra.mxu3 %v1044_v0  ;;  %v235_v0 = vrot.slane %v164_v39, 6 }
 0x255   :  { %485 = vmatpush.msra.mxu3 %v1049_v2 }
 0x257   :  { %486 = vmatpush.msra.mxu3 %v1058_v5 }
 0x259   :  { %487 = vmatpush.msra.mxu3 %v1073_v8 }
 0x2d5   :  { %v190_v41 = vpop.f32.mrf.mxu3 }
 0x2d6   :  { %v216_v42 = vadd.f32 %v190_v41, %v1101_v9  ;;  %v194_v44 = vrot.slane %v190_v41, 6 }
 0x2d8   :  { %v218_v43 = vrot.slane %v216_v42, 6  ;;  %v196_v45 = vadd.f32 %v194_v44, %v1111_v14 }
 0x2da   :  { %219 = vrot.lane.b32.xlu0 %v218_v43, %s981_s30  ;;  %v815_v46 = vmul.f32 -1.442695, %v196_v45 }
 0x2dc   :  { %849 = vpow2.f32 %v815_v46 }
 0x2e2   :  { %v850_v47 = vpop.eup %849 }
 0x2e3   :  { %v200_v48 = vadd.f32 1.0, %v850_v47 }
 0x2e5   :  { %851 = vrcp.f32 %v200_v48  ;;  %v212_v54 = vand.u32 2147483648, %v200_v48  ;;  %vm206_vm8 = vweird.f32 %v200_v48  ;;  %v210_v55 = vand.u32 2147483647, %v200_v48 }
 0x2e7   :  { %v213_v57 = vor.u32 1.1754944e-38, %v212_v54  ;;  %vm211_vm10 = vcmp.eq.f32.partialorder %v210_v55, 8.507059e+37 }
 0x2eb   :  { %v852_v49 = vpop.eup %851 }
 0x2ec   :  { %v202_v50 = vmul.f32 %v852_v49, %v200_v48  ;;  %vm207_vm7 = vweird.f32 %v852_v49 }
 0x2ed   :  { %vm208_vm9 = vmor %vm206_vm8, %vm207_vm7 }
 0x2ee   :  { %v203_v51 = vsub.f32 1.0, %v202_v50 }
 0x2f0   :  { %v204_v52 = vmul.f32 %v852_v49, %v203_v51 }
 0x2f2   :  { %v205_v53 = vadd.f32 %v852_v49, %v204_v52 }
 0x2f4   :  { %v209_v56 = vsel %vm208_vm9, %v852_v49, %v205_v53 }
 0x2f5   :  { %v214_v59 = vsel %vm211_vm10, %v213_v57, %v209_v56 }
 0x2f6   :  { %v229_v1 = vsub.f32 1.0, %v214_v59  ;;  %v237_v4 = vmul.f32 %v235_v0, %v214_v59 }
 0x34c   :  { %v220_v58 = vpop.permute.xlu0 %219 }
 0x34d   :  { %v222_v60 = vmul.f32 %v220_v58, %v214_v59 }
 0x34f   :  { %224 = vrot.lane.b32.xlu1 %v222_v60, %s981_s30 }
 0x3c1   :  { %v225_v61 = vpop.permute.xlu1 %224 }
 0x3c2   :  { %v227_v62 = vadd.f32 %v225_v61, %v1111_v14 }
 0x3c4   :  { %853 = vtanh.f32 %v227_v62 }
 0x3ca   :  { %v854_v63 = vpop.eup %853 }
 0x3cb   :  { %231 = vrot.lane.b32.xlu2 %v854_v63, %s982_s3 }
 0x425   :  { %v232_v2 = vpop.permute.xlu2 %231 }
 0x426   :  { %v234_v3 = vmul.f32 %v232_v2, %v229_v1 }
 0x428   :  { %v1130_v5 = vadd.f32 %v237_v4, %v234_v3 }
 0x42a   :  { %v245_v6 = vrot.slane %v1130_v5, 2  ;;  %v312_v35 = vrot.slane %v1130_v5, 6 }
 0x42c   :  { %246 = vrot.lane.b32.xlu0 %v245_v6, %s982_s3 }
 0x49e   :  { %v247_v7 = vpop.permute.xlu0 %246 }
 0x49f   :  { %816 = vmatmul.msk.f32.vlgmr.msrb.gmra.mxu3 %vm93_vm1, %v247_v7 }
 0x522   :  { %v267_v8 = vpop.f32.mrf.mxu3 }
 0x523   :  { %v293_v10 = vadd.f32 %v267_v8, %v1101_v9  ;;  %v271_v13 = vrot.slane %v267_v8, 4 }
 0x525   :  { %v295_v11 = vrot.slane %v293_v10, 4  ;;  %v273_v15 = vadd.f32 %v271_v13, %v1111_v14 }
 0x527   :  { %296 = vrot.lane.b32.xlu1 %v295_v11, %s981_s30  ;;  %v817_v16 = vmul.f32 -1.442695, %v273_v15 }
 0x529   :  { %855 = vpow2.f32 %v817_v16 }
 0x52f   :  { %v856_v17 = vpop.eup %855 }
 0x530   :  { %v277_v18 = vadd.f32 1.0, %v856_v17 }
 0x532   :  { %857 = vrcp.f32 %v277_v18  ;;  %v289_v24 = vand.u32 2147483648, %v277_v18  ;;  %vm283_vm12 = vweird.f32 %v277_v18  ;;  %v287_v25 = vand.u32 2147483647, %v277_v18 }
 0x534   :  { %v290_v27 = vor.u32 1.1754944e-38, %v289_v24  ;;  %vm288_vm14 = vcmp.eq.f32.partialorder %v287_v25, 8.507059e+37 }
 0x538   :  { %v858_v19 = vpop.eup %857 }
 0x539   :  { %v279_v20 = vmul.f32 %v858_v19, %v277_v18  ;;  %vm284_vm11 = vweird.f32 %v858_v19 }
 0x53a   :  { %vm285_vm13 = vmor %vm283_vm12, %vm284_vm11 }
 0x53b   :  { %v280_v21 = vsub.f32 1.0, %v279_v20 }
 0x53d   :  { %v281_v22 = vmul.f32 %v858_v19, %v280_v21 }
 0x53f   :  { %v282_v23 = vadd.f32 %v858_v19, %v281_v22 }
 0x541   :  { %v286_v26 = vsel %vm285_vm13, %v858_v19, %v282_v23 }
 0x542   :  { %v291_v29 = vsel %vm288_vm14, %v290_v27, %v286_v26 }
 0x543   :  { %v306_v34 = vsub.f32 1.0, %v291_v29  ;;  %v314_v37 = vmul.f32 %v312_v35, %v291_v29 }
 0x599   :  { %v297_v28 = vpop.permute.xlu1 %296 }
 0x59a   :  { %v299_v30 = vmul.f32 %v297_v28, %v291_v29 }
 0x59c   :  { %301 = vrot.lane.b32.xlu2 %v299_v30, %s981_s30 }
 0x5f6   :  { %v302_v31 = vpop.permute.xlu2 %301 }
 0x5f7   :  { %v304_v32 = vadd.f32 %v302_v31, %v1111_v14 }
 0x5f9   :  { %859 = vtanh.f32 %v304_v32 }
 0x5ff   :  { %v860_v33 = vpop.eup %859 }
 0x600   :  { %308 = vrot.lane.b32.xlu0 %v860_v33, %s982_s3 }
 0x672   :  { %v309_v36 = vpop.permute.xlu0 %308 }
 0x673   :  { %v311_v38 = vmul.f32 %v309_v36, %v306_v34 }
 0x675   :  { %v1142_v39 = vadd.f32 %v314_v37, %v311_v38 }
 0x677   :  { %v322_v40 = vrot.slane %v1142_v39, 4  ;;  %v389_v2 = vrot.slane %v1142_v39, 6 }
 0x679   :  { %323 = vrot.lane.b32.xlu1 %v322_v40, %s982_s3 }
 0x6eb   :  { %v324_v41 = vpop.permute.xlu1 %323 }
 0x6ec   :  { %818 = vmatmul.msk.f32.vlgmr.msrb.gmra.mxu1 %vm93_vm1, %v324_v41 }
 0x769   :  { %v344_v42 = vpop.f32.mrf.mxu1 }
 0x76a   :  { %v370_v43 = vadd.f32 %v344_v42, %v1101_v9  ;;  %v348_v45 = vrot.slane %v344_v42, 2 }
 0x76c   :  { %v372_v44 = vrot.slane %v370_v43, 2  ;;  %v350_v46 = vadd.f32 %v348_v45, %v1111_v14 }
 0x76e   :  { %373 = vrot.lane.b32.xlu2 %v372_v44, %s981_s30  ;;  %v819_v47 = vmul.f32 -1.442695, %v350_v46 }
 0x770   :  { %861 = vpow2.f32 %v819_v47 }
 0x776   :  { %v862_v48 = vpop.eup %861 }
 0x777   :  { %v354_v49 = vadd.f32 1.0, %v862_v48 }
 0x779   :  { %863 = vrcp.f32 %v354_v49  ;;  %v366_v55 = vand.u32 2147483648, %v354_v49  ;;  %vm360_vm2 = vweird.f32 %v354_v49  ;;  %v364_v56 = vand.u32 2147483647, %v354_v49 }
 0x77b   :  { %v367_v58 = vor.u32 1.1754944e-38, %v366_v55  ;;  %vm365_vm4 = vcmp.eq.f32.partialorder %v364_v56, 8.507059e+37 }
 0x77f   :  { %v864_v50 = vpop.eup %863 }
 0x780   :  { %v356_v51 = vmul.f32 %v864_v50, %v354_v49  ;;  %vm361_vm15 = vweird.f32 %v864_v50 }
 0x781   :  { %vm362_vm3 = vmor %vm360_vm2, %vm361_vm15 }
 0x782   :  { %v357_v52 = vsub.f32 1.0, %v356_v51 }
 0x784   :  { %v358_v53 = vmul.f32 %v864_v50, %v357_v52 }
 0x786   :  { %v359_v54 = vadd.f32 %v864_v50, %v358_v53 }
 0x788   :  { %v363_v57 = vsel %vm362_vm3, %v864_v50, %v359_v54 }
 0x789   :  { %v368_v60 = vsel %vm365_vm4, %v367_v58, %v363_v57 }
 0x78a   :  { %v383_v1 = vsub.f32 1.0, %v368_v60  ;;  %v391_v4 = vmul.f32 %v389_v2, %v368_v60 }
 0x7c8   :  { %v374_v59 = vpop.permute.xlu2 %373 }
 0x7c9   :  { %v376_v61 = vmul.f32 %v374_v59, %v368_v60 }
 0x7cb   :  { %378 = vrot.lane.b32.xlu0 %v376_v61, %s981_s30 }
 0x83d   :  { %v379_v62 = vpop.permute.xlu0 %378 }
 0x83e   :  { %v381_v63 = vadd.f32 %v379_v62, %v1111_v14  ;;  %v50_v14 = vld [vmem:[%s1239_s0 + $0x8] sm:$0xff] }
 0x83f   :  { %811 = vmatmul.msk.f32.gmra.mxu0 %vm57_vm0, %v50_v14 }
 0x840   :  { %865 = vtanh.f32 %v381_v63 }
 0x846   :  { %v866_v0 = vpop.eup %865 }
 0x847   :  { %385 = vrot.lane.b32.xlu1 %v866_v0, %s982_s3 }
 0x8b9   :  { %v386_v3 = vpop.permute.xlu1 %385 }
 0x8ba   :  { %v388_v6 = vmul.f32 %v386_v3, %v383_v1 }
 0x8bc   :  { %v1154_v7 = vadd.f32 %v391_v4, %v388_v6  ;;  %v84_v15 = vpop.f32.mrf.mxu0 }
 0x8bd   :  { %v1166_v16 = vadd.f32 %v1108_v12, %v84_v15 }
 0x8be   :  { %v399_v8 = vrot.slane %v1154_v7, 6 }
 0x8c0   :  { %400 = vrot.lane.b32.xlu2 %v399_v8, %s982_s3 }
 0x91a   :  { %v401_v10 = vpop.permute.xlu2 %400 }
 0x91b   :  { %820 = vmatmul.msk.f32.vlgmr.msra.gmra.mxu2 %vm93_vm1, %v401_v10 }
 0x99e   :  { %v421_v11 = vpop.f32.mrf.mxu2 }
 0x99f   :  { %v444_v13 = vadd.f32 %v421_v11, %v1101_v9  ;;  %v424_v17 = vadd.f32 %v421_v11, %v1166_v16 }
 0x9a1   :  { %446 = vrot.lane.b32.xlu0 %v444_v13, %s981_s30  ;;  %v821_v18 = vmul.f32 -1.442695, %v424_v17 }
 0x9a3   :  { %867 = vpow2.f32 %v821_v18 }
 0x9a9   :  { %v868_v19 = vpop.eup %867 }
 0x9aa   :  { %v428_v20 = vadd.f32 1.0, %v868_v19 }
 0x9ac   :  { %869 = vrcp.f32 %v428_v20  ;;  %v440_v26 = vand.u32 2147483648, %v428_v20  ;;  %vm434_vm7 = vweird.f32 %v428_v20  ;;  %v438_v27 = vand.u32 2147483647, %v428_v20 }
 0x9ae   :  { %v441_v12 = vor.u32 1.1754944e-38, %v440_v26  ;;  %vm439_vm9 = vcmp.eq.f32.partialorder %v438_v27, 8.507059e+37 }
 0x9b2   :  { %v870_v21 = vpop.eup %869 }
 0x9b3   :  { %v430_v22 = vmul.f32 %v870_v21, %v428_v20  ;;  %vm435_vm5 = vweird.f32 %v870_v21 }
 0x9b4   :  { %vm436_vm8 = vmor %vm434_vm7, %vm435_vm5 }
 0x9b5   :  { %v431_v23 = vsub.f32 1.0, %v430_v22 }
 0x9b7   :  { %v432_v24 = vmul.f32 %v870_v21, %v431_v23 }
 0x9b9   :  { %v433_v25 = vadd.f32 %v870_v21, %v432_v24 }
 0x9bb   :  { %v437_v28 = vsel %vm436_vm8, %v870_v21, %v433_v25  ;;  %vm243_vm8 = vcmask 257026  }
 0x9bc   :  { %v442_v30 = vsel %vm439_vm9, %v441_v12, %v437_v28  ;;  %vm320_vm9 = vcmask 259076  }
 0x9bd   :  { %v456_v35 = vsub.f32 1.0, %v442_v30  ;;  %v463_v37 = vmul.f32 %v442_v30, %v399_v8 }
 0xa13   :  { %v447_v29 = vpop.permute.xlu0 %446 }
 0xa14   :  { %v449_v31 = vmul.f32 %v447_v29, %v442_v30 }
 0xa16   :  { %451 = vrot.lane.b32.xlu1 %v449_v31, %s981_s30 }
 0xa88   :  { %v452_v32 = vpop.permute.xlu1 %451 }
 0xa89   :  { %v454_v33 = vadd.f32 %v452_v32, %v1166_v16 }
 0xa8b   :  { %871 = vtanh.f32 %v454_v33 }
 0xa91   :  { %v872_v34 = vpop.eup %871 }
 0xa92   :  { %458 = vrot.lane.b32.xlu2 %v872_v34, %s982_s3 }
 0xaec   :  { %v459_v36 = vpop.permute.xlu2 %458 }
 0xaed   :  { %v461_v38 = vmul.f32 %v459_v36, %v456_v35 }
 0xaef   :  { %v464_v40 = vadd.f32 %v463_v37, %v461_v38 }
 0xaf1   :  { %466 = vrot.lane.b32.xlu0 %v464_v40, %s982_s3  ;;  %v534_v1 = vrot.slane %v464_v40, 6 }
 0xb63   :  { %v467_v41 = vpop.permute.xlu0 %466 }
 0xb64   :  { %469 = vst.msk [vmem:[#allocation2 + $0x8] sm:$0x3] %vm169_vm6, %v467_v41  ;;  %822 = vmatmul.msk.f32.vlgmr.msra.gmra.mxu3 %vm93_vm1, %v467_v41 }
 0xbe7   :  { %v489_v42 = vpop.f32.mrf.mxu3 }
 0xbe8   :  { %v515_v43 = vadd.f32 %v489_v42, %v1101_v9  ;;  %v493_v45 = vrot.slane %v489_v42, 6 }
 0xbea   :  { %v517_v44 = vrot.slane %v515_v43, 6  ;;  %v495_v46 = vadd.f32 %v493_v45, %v1166_v16 }
 0xbec   :  { %518 = vrot.lane.b32.xlu1 %v517_v44, %s981_s30  ;;  %v823_v47 = vmul.f32 -1.442695, %v495_v46 }
 0xbee   :  { %873 = vpow2.f32 %v823_v47 }
 0xbf4   :  { %v874_v48 = vpop.eup %873 }
 0xbf5   :  { %v499_v49 = vadd.f32 1.0, %v874_v48 }
 0xbf7   :  { %875 = vrcp.f32 %v499_v49  ;;  %v511_v55 = vand.u32 2147483648, %v499_v49  ;;  %vm505_vm10 = vweird.f32 %v499_v49  ;;  %v509_v56 = vand.u32 2147483647, %v499_v49 }
 0xbf9   :  { %v512_v58 = vor.u32 1.1754944e-38, %v511_v55  ;;  %vm510_vm12 = vcmp.eq.f32.partialorder %v509_v56, 8.507059e+37 }
 0xbfd   :  { %v876_v50 = vpop.eup %875 }
 0xbfe   :  { %v501_v51 = vmul.f32 %v876_v50, %v499_v49  ;;  %vm506_vm6 = vweird.f32 %v876_v50 }
 0xbff   :  { %vm507_vm11 = vmor %vm505_vm10, %vm506_vm6  ;;  %vm397_vm6 = vcmask 261126  }
 0xc00   :  { %v502_v52 = vsub.f32 1.0, %v501_v51 }
 0xc02   :  { %v503_v53 = vmul.f32 %v876_v50, %v502_v52 }
 0xc04   :  { %v504_v54 = vadd.f32 %v876_v50, %v503_v53 }
 0xc06   :  { %v508_v57 = vsel %vm507_vm11, %v876_v50, %v504_v54 }
 0xc07   :  { %v513_v60 = vsel %vm510_vm12, %v512_v58, %v508_v57 }
 0xc08   :  { %v528_v2 = vsub.f32 1.0, %v513_v60  ;;  %v536_v6 = vmul.f32 %v534_v1, %v513_v60 }
 0xc5e   :  { %v519_v59 = vpop.permute.xlu1 %518 }
 0xc5f   :  { %v521_v61 = vmul.f32 %v519_v59, %v513_v60 }
 0xc61   :  { %523 = vrot.lane.b32.xlu2 %v521_v61, %s981_s30 }
 0xcbb   :  { %v524_v62 = vpop.permute.xlu2 %523 }
 0xcbc   :  { %v526_v63 = vadd.f32 %v524_v62, %v1166_v16 }
 0xcbe   :  { %877 = vtanh.f32 %v526_v63 }
 0xcc4   :  { %v878_v0 = vpop.eup %877 }
 0xcc5   :  { %530 = vrot.lane.b32.xlu0 %v878_v0, %s982_s3 }
 0xd37   :  { %v531_v3 = vpop.permute.xlu0 %530 }
 0xd38   :  { %v533_v4 = vmul.f32 %v531_v3, %v528_v2 }
 0xd3a   :  { %v537_v8 = vadd.f32 %v536_v6, %v533_v4 }
 0xd3c   :  { %v543_v14 = vrot.slane %v537_v8, 2  ;;  %v610_v37 = vrot.slane %v537_v8, 6 }
 0xd3e   :  { %544 = vrot.lane.b32.xlu1 %v543_v14, %s982_s3  ;;  %v698_v14 = vld [vmem:[%s1245_s6] sm:$0xff] }
 0xdb0   :  { %v545_v10 = vpop.permute.xlu1 %544 }
 0xdb1   :  { %824 = vmatmul.msk.f32.vlgmr.msrb.gmra.mxu0 %vm93_vm1, %v545_v10 }
 0xe2e   :  { %v565_v11 = vpop.f32.mrf.mxu0 }
 0xe2f   :  { %v591_v13 = vadd.f32 %v565_v11, %v1101_v9  ;;  %v569_v17 = vrot.slane %v565_v11, 4 }
 0xe31   :  { %v593_v15 = vrot.slane %v591_v13, 4  ;;  %v571_v18 = vadd.f32 %v569_v17, %v1166_v16 }
 0xe33   :  { %594 = vrot.lane.b32.xlu2 %v593_v15, %s981_s30  ;;  %v825_v19 = vmul.f32 -1.442695, %v571_v18 }
 0xe35   :  { %879 = vpow2.f32 %v825_v19 }
 0xe3b   :  { %v880_v20 = vpop.eup %879 }
 0xe3c   :  { %v575_v21 = vadd.f32 1.0, %v880_v20 }
 0xe3e   :  { %881 = vrcp.f32 %v575_v21  ;;  %v587_v27 = vand.u32 2147483648, %v575_v21  ;;  %vm581_vm14 = vweird.f32 %v575_v21  ;;  %v585_v28 = vand.u32 2147483647, %v575_v21 }
 0xe40   :  { %v588_v29 = vor.u32 1.1754944e-38, %v587_v27  ;;  %vm586_vm2 = vcmp.eq.f32.partialorder %v585_v28, 8.507059e+37 }
 0xe44   :  { %v882_v22 = vpop.eup %881 }
 0xe45   :  { %v577_v23 = vmul.f32 %v882_v22, %v575_v21  ;;  %vm582_vm13 = vweird.f32 %v882_v22 }
 0xe46   :  { %vm583_vm15 = vmor %vm581_vm14, %vm582_vm13 }
 0xe47   :  { %v578_v24 = vsub.f32 1.0, %v577_v23 }
 0xe49   :  { %v579_v25 = vmul.f32 %v882_v22, %v578_v24 }
 0xe4b   :  { %v580_v26 = vadd.f32 %v882_v22, %v579_v25 }
 0xe4d   :  { %v584_v12 = vsel %vm583_vm15, %v882_v22, %v580_v26  ;;  %v842_v22 = vld [vmem:[%s1246_s7] ss:$0 sm:$0xff]  ;;  %s984_s7 = smov [#allocation6]  }
 0xe4e   :  { %v589_v31 = vsel %vm586_vm2, %v588_v29, %v584_v12  ;;  %s779_s9 = sshll.u32 %s984_s7, 4  ;;  %s780_s9 = int_to_ptr.vmem [resolvable:$true] %s779_s9 }
 0xe4f   :  { %v604_v36 = vsub.f32 1.0, %v589_v31  ;;  %v612_v40 = vmul.f32 %v610_v37, %v589_v31 }
 0xe8d   :  { %v595_v30 = vpop.permute.xlu2 %594 }
 0xe8e   :  { %v597_v32 = vmul.f32 %v595_v30, %v589_v31 }
 0xe90   :  { %599 = vrot.lane.b32.xlu0 %v597_v32, %s981_s30 }
 0xf02   :  { %v600_v33 = vpop.permute.xlu0 %599 }
 0xf03   :  { %v602_v34 = vadd.f32 %v600_v33, %v1166_v16 }
 0xf05   :  { %883 = vtanh.f32 %v602_v34 }
 0xf0b   :  { %v884_v35 = vpop.eup %883 }
 0xf0c   :  { %606 = vrot.lane.b32.xlu1 %v884_v35, %s982_s3 }
 0xf7e   :  { %v607_v38 = vpop.permute.xlu1 %606 }
 0xf7f   :  { %v609_v41 = vmul.f32 %v607_v38, %v604_v36 }
 0xf81   :  { %v1189_v42 = vadd.f32 %v612_v40, %v609_v41 }
 0xf83   :  { %v619_v43 = vrot.slane %v1189_v42, 4  ;;  %v686_v10 = vrot.slane %v1189_v42, 6 }
 0xf85   :  { %620 = vrot.lane.b32.xlu2 %v619_v43, %s982_s3 }
 0xfdf   :  { %v621_v44 = vpop.permute.xlu2 %620 }
 0xfe0   :  { %826 = vmatmul.msk.f32.vlgmr.msra.gmra.mxu1 %vm93_vm1, %v621_v44 }
0x105d   :  { %v641_v45 = vpop.f32.mrf.mxu1 }
0x105e   :  { %v667_v46 = vadd.f32 %v641_v45, %v1101_v9  ;;  %v645_v48 = vrot.slane %v641_v45, 2 }
0x1060   :  { %v669_v47 = vrot.slane %v667_v46, 2  ;;  %v647_v49 = vadd.f32 %v645_v48, %v1166_v16 }
0x1062   :  { %670 = vrot.lane.b32.xlu0 %v669_v47, %s981_s30  ;;  %v827_v50 = vmul.f32 -1.442695, %v647_v49 }
0x1064   :  { %885 = vpow2.f32 %v827_v50 }
0x106a   :  { %240 = vrot.lane.b32.xlu0 %v1130_v5, %s982_s3  ;;  %v886_v51 = vpop.eup %885 }
0x106b   :  { %v651_v52 = vadd.f32 1.0, %v886_v51 }
0x106d   :  { %887 = vrcp.f32 %v651_v52  ;;  %v663_v57 = vand.u32 2147483648, %v651_v52  ;;  %vm657_vm4 = vweird.f32 %v651_v52  ;;  %v661_v58 = vand.u32 2147483647, %v651_v52 }
0x106f   :  { %v664_v59 = vor.u32 1.1754944e-38, %v663_v57  ;;  %vm662_vm7 = vcmp.eq.f32.partialorder %v661_v58, 8.507059e+37 }
0x1072   :  { %539 = vrot.lane.b32.xlu0 %v537_v8, %s982_s3  ;;  %v699_v8 = vld [vmem:[%s1245_s6 + $0x8] sm:$0xff] }
0x1073   :  { %v888_v53 = vpop.eup %887 }
0x1074   :  { %v653_v54 = vmul.f32 %v888_v53, %v651_v52  ;;  %vm658_vm3 = vweird.f32 %v888_v53 }
0x1075   :  { %vm659_vm5 = vmor %vm657_vm4, %vm658_vm3 }
0x1076   :  { %v654_v55 = vsub.f32 1.0, %v653_v54 }
0x1078   :  { %v655_v9 = vmul.f32 %v888_v53, %v654_v55 }
0x107a   :  { %v656_v56 = vadd.f32 %v888_v53, %v655_v9 }
0x107c   :  { %v660_v5 = vsel %vm659_vm5, %v888_v53, %v656_v56 }
0x107d   :  { %v665_v61 = vsel %vm662_vm7, %v664_v59, %v660_v5 }
0x107e   :  { %v688_v13 = vmul.f32 %v686_v10, %v665_v61 }
0x10d4   :  { %v671_v60 = vpop.permute.xlu0 %670 }
0x10d5   :  { %v673_v62 = vmul.f32 %v671_v60, %v665_v61 }
0x10d7   :  { %675 = vrot.lane.b32.xlu1 %v673_v62, %s981_s30 }
0x10dc   :  { %v241_v63 = vpop.permute.xlu0 %240 }
0x10dd   :  { %244 = vst.msk [vmem:[#allocation2] sm:$0xc] %vm243_vm8, %v241_v63 }
0x10df   :  { %317 = vrot.lane.b32.xlu1 %v1142_v39, %s982_s3  ;;  %v701_v39 = vld [vmem:[%s1245_s6 + $0x18] sm:$0xff] }
0x10e0   :  { %724 = vmatpush.msrb.mxu2 %v701_v39 }
0x10e4   :  { %v540_v0 = vpop.permute.xlu0 %539 }
0x10e5   :  { %542 = vst.msk [vmem:[#allocation2 + $0x8] sm:$0xc] %vm243_vm8, %v540_v0 }
0x10e7   :  { %615 = vrot.lane.b32.xlu1 %v1189_v42, %s982_s3 }
0x1149   :  { %v676_v1 = vpop.permute.xlu1 %675 }
0x114a   :  { %v678_v2 = vadd.f32 %v676_v1, %v1166_v16  ;;  %v700_v16 = vld [vmem:[%s1245_s6 + $0x10] sm:$0xff]  ;;  %s983_s6 = smov [#allocation7]  }
0x114b   :  { %725 = vmatpush.msrb.mxu2 %v700_v16  ;;  %s793_s19 = sshll.u32 %s983_s6, 4  ;;  %s794_s19 = int_to_ptr.vmem [resolvable:$true] %s793_s19 }
0x114c   :  { %889 = vtanh.f32 %v678_v2 }
0x114d   :  { %726 = vmatpush.msrb.mxu2 %v699_v8 }
0x114f   :  { %727 = vmatpush.msrb.mxu2 %v698_v14 }
0x1151   :  { %v318_v3 = vpop.permute.xlu1 %317 }
0x1152   :  { %v890_v4 = vpop.eup %889  ;;  %321 = vst.msk [vmem:[#allocation2] sm:$0x30] %vm320_vm9, %v318_v3 }
0x1153   :  { %682 = vrot.lane.b32.xlu2 %v890_v4, %s982_s3 }
0x1159   :  { %v616_v6 = vpop.permute.xlu1 %615 }
0x115a   :  { %618 = vst.msk [vmem:[#allocation2 + $0x8] sm:$0x30] %vm320_vm9, %v616_v6 }
0x115b   :  { %394 = vrot.lane.b32.xlu2 %v1154_v7, %s982_s3  ;;  %v680_v7 = vsub.f32 1.0, %v665_v61 }
0x11ad   :  { %v683_v11 = vpop.permute.xlu2 %682 }
0x11ae   :  { %v685_v15 = vmul.f32 %v683_v11, %v680_v7 }
0x11b0   :  { %v689_v17 = vadd.f32 %v688_v13, %v685_v15 }
0x11b2   :  { %691 = vrot.lane.b32.xlu2 %v689_v17, %s982_s3 }
0x11b5   :  { %v395_v18 = vpop.permute.xlu2 %394 }
0x11b6   :  { %398 = vst.msk [vmem:[#allocation2] sm:$0xc0] %vm397_vm6, %v395_v18 }
0x11bd   :  { %v696_v19 = vld [vmem:[#allocation2] sm:$0xff] }
0x11be   :  { %828 = vmatmul.msk.f32.vlgmr.msrb.gmra.mxu2 %vm93_vm1, %v696_v19 }
0x120c   :  { %v692_v20 = vpop.permute.xlu2 %691 }
0x120d   :  { %694 = vst.msk [vmem:[#allocation2 + $0x8] sm:$0xc0] %vm397_vm6, %v692_v20 }
0x120e   :  { %695 = vst.msk [vmem:[#allocation7 - $0x6] sm:$0xc0] %vm397_vm6, %v692_v20 }
0x120f   :  { %798 = dma.vmem_to_hbm [thread:$0]  %s794_s19, 32, %s796_s22, [#allocation8]  }
0x1214   :  { %v697_v21 = vld [vmem:[#allocation2 + $0x8] sm:$0xff] }
0x1215   :  { %829 = vmatmul.msk.f32.gmra.mxu2 %vm93_vm1, %v697_v21 }
0x1241   :  { %v729_v23 = vpop.f32.mrf.mxu2 }
0x1242   :  { %v730_v24 = vadd.f32 %v842_v22, %v729_v23 }
0x1244   :  { %v830_v25 = vmul.f32 -1.442695, %v730_v24 }
0x1246   :  { %891 = vpow2.f32 %v830_v25 }
0x124c   :  { %v892_v26 = vpop.eup %891 }
0x124d   :  { %v741_v27 = vadd.f32 1.0, %v892_v26 }
0x124f   :  { %893 = vrcp.f32 %v741_v27  ;;  %v754_v30 = vand.u32 2147483648, %v741_v27  ;;  %v752_v32 = vand.u32 2147483647, %v741_v27  ;;  %vm748_vm10 = vweird.f32 %v741_v27 }
0x1251   :  { %v755_v34 = vor.u32 1.1754944e-38, %v754_v30  ;;  %vm753_vm12 = vcmp.eq.f32.partialorder %v752_v32, 8.507059e+37 }
0x1255   :  { %v894_v28 = vpop.eup %893 }
0x1256   :  { %v744_v12 = vmul.f32 %v894_v28, %v741_v27  ;;  %vm749_vm1 = vweird.f32 %v894_v28 }
0x1257   :  { %vm750_vm11 = vmor %vm748_vm10, %vm749_vm1 }
0x1258   :  { %v745_v29 = vsub.f32 1.0, %v744_v12 }
0x125a   :  { %v746_v31 = vmul.f32 %v894_v28, %v745_v29 }
0x125c   :  { %v747_v33 = vadd.f32 %v894_v28, %v746_v31 }
0x125e   :  { %v751_v35 = vsel %vm750_vm11, %v894_v28, %v747_v33 }
0x125f   :  { %v756_v36 = vsel %vm753_vm12, %v755_v34, %v751_v35 }
0x1260   :  { %773 = vst.msk [vmem:[#allocation6] sm:$0xff] %vm57_vm0, %v756_v36 }
0x1298   :  { %v732_v37 = vpop.f32.mrf.mxu2 }
0x1299   :  { %v733_v38 = vadd.f32 %v842_v22, %v732_v37 }
0x129b   :  { %v831_v40 = vmul.f32 -1.442695, %v733_v38 }
0x129d   :  { %895 = vpow2.f32 %v831_v40 }
0x12a3   :  { %v896_v41 = vpop.eup %895 }
0x12a4   :  { %v742_v42 = vadd.f32 1.0, %v896_v41 }
0x12a6   :  { %897 = vrcp.f32 %v742_v42  ;;  %v769_v46 = vand.u32 2147483648, %v742_v42  ;;  %v767_v48 = vand.u32 2147483647, %v742_v42  ;;  %vm763_vm14 = vweird.f32 %v742_v42 }
0x12a8   :  { %v770_v50 = vor.u32 1.1754944e-38, %v769_v46  ;;  %vm768_vm2 = vcmp.eq.f32.partialorder %v767_v48, 8.507059e+37 }
0x12ac   :  { %v898_v43 = vpop.eup %897 }
0x12ad   :  { %v759_v44 = vmul.f32 %v898_v43, %v742_v42  ;;  %vm764_vm13 = vweird.f32 %v898_v43 }
0x12ae   :  { %vm765_vm15 = vmor %vm763_vm14, %vm764_vm13 }
0x12af   :  { %v760_v45 = vsub.f32 1.0, %v759_v44 }
0x12b1   :  { %v761_v47 = vmul.f32 %v898_v43, %v760_v45 }
0x12b3   :  { %v762_v49 = vadd.f32 %v898_v43, %v761_v47 }
0x12b5   :  { %v766_v51 = vsel %vm765_vm15, %v898_v43, %v762_v49 }
0x12b6   :  { %v771_v52 = vsel %vm768_vm2, %v770_v50, %v766_v51 }
0x12b7   :  { %774 = vst.msk [vmem:[#allocation6 + $0x8] sm:$0xff] %vm57_vm0, %v771_v52 }
0x12b8   :  { %787 = dma.vmem_to_hbm [thread:$0]  %s780_s9, 256, %s782_s27, [#allocation5], %s978_s14, %s978_s14, %s979_s15  }
0x12b9   :  { %973 = dma.done.wait [#allocation5], 256  }
0x12ba   :  { %974 = vsyncadd [#allocation5], 4294967040 }
0x12bb   :  { %975 = dma.done.wait [#allocation8], 32  }
0x12bc   :  { %976 = vsyncadd [#allocation8], 4294967264 }
0x12bd   :  { %807 = vsyncpa [#allocation4], 1 }
0x12be   :  { %808 = vsyncpa [#allocation5], 1 }
0x12bf   :  { %809 = vsyncpa [#allocation8], 1 }

</bundles_post_ra>
